<compile_context>
chip_gen: v7x
topology: tpu7x:2x2x1
jax: 0.10.0
libtpu: 0.0.40
codegen_flags: <defaults>
</compile_context>

<pallas_src>
import math

import jax
import jax.numpy as jnp
from jax.experimental import pallas as pl
from jax.experimental.pallas import tpu as pltpu


def _round_up(x, m):
    return (x + m - 1) // m * m


def _cdiv(a, b):
    return (a + b - 1) // b


def _padded_tile_bytes(rows, cols, itemsize):
    """VMEM footprint of a (rows, cols) tile after (sublane, lane) padding."""
    sub = 8 * max(1, 4 // itemsize)          # f32 -> 8, bf16 -> 16, int8 -> 32
    return _round_up(rows, sub) * _round_up(cols, 128) * itemsize


def roi_head_kernel(x_ref, w1_ref, b1_ref, w2_ref, b2_ref, o_ref, acc_ref):
    """One (N-tile, K-tile) step of RoIHead.

    x_ref : (TILE_N, TILE_K)   -- flat (c, h, w) slice of NCHW x (lane = K)
    w1_ref: (TILE_K, O_pad)    -- mean-folded, HW-expanded mlp1 weight slice
    b1_ref: (1, O_pad) f32
    w2_ref: (O_pad, O_pad)
    b2_ref: (1, O_pad) f32
    o_ref : (TILE_N, O_pad)    -- lane-dense output tile
    acc_ref: (TILE_N, O_pad) f32 scratch accumulator (lives across K steps)
    """
    k = pl.program_id(1)

    @pl.when(k == 0)
    def _init():
        acc_ref[...] = jnp.zeros_like(acc_ref)

    # Fused "mean over HW + mlp1" partial product on the MXU (f32 accumulate).
    acc_ref[...] += jnp.dot(x_ref[...], w1_ref[...],
                            preferred_element_type=jnp.float32)

    @pl.when(k == pl.num_programs(1) - 1)
    def _finalize():
        h = jnp.maximum(acc_ref[...] + b1_ref[...], 0.0)           # bias + ReLU
        out = jnp.dot(h.astype(w2_ref.dtype), w2_ref[...],
                      preferred_element_type=jnp.float32) + b2_ref[...]
        o_ref[...] = out.astype(o_ref.dtype)


def roi_head_forward(x_nchw, w1, b1, w2, b2, *, tile_n=None, vmem_limit_bytes=None):
    """RoIHead forward: x.mean((2,3)) -> mlp1 -> ReLU -> mlp2.  Returns (N, O) f32.

    x_nchw: (N, C, H, W); w1: (C, O); b1: (O,); w2: (O, O); b2: (O,)
    (weights stored transposed vs. torch's (out, in)).
    """
    N, C, H, W = x_nchw.shape
    HW = H * W
    K = C * HW
    O = w1.shape[1]
    O_pad = _round_up(max(O, 1), 128)

    x_item = jnp.dtype(x_nchw.dtype).itemsize
    w_dtype = x_nchw.dtype                    # feed the MXU in the activation dtype
    w_item = jnp.dtype(w_dtype).itemsize

    # ---- generation-aware VMEM budget ---------------------------------------
    if vmem_limit_bytes is None:
        try:
            cap = pltpu.get_tpu_info().vmem_capacity_bytes
        except Exception:
            cap = 128 << 20
        # v7x (64 MiB/TC) -> ~48 MiB; v5e/v6e (128 MiB) -> ~96 MiB.
        vmem_limit_bytes = min(int(cap * 0.75), 96 << 20)

    # ---- K (= C*HW) tiling: keep W1e VMEM-resident when it fits -------------
    w1e_budget = vmem_limit_bytes // 3        # constant-index blocks still double-buffer
    if 2 * _padded_tile_bytes(K, O_pad, w_item) <= w1e_budget:
        tile_k, k_tiles = K, 1
    else:
        # C-aligned chunks so tile_k divides K exactly (no masked K boundary,
        # which would corrupt the accumulation) and is a multiple of 128.
        c_base = 128 // math.gcd(HW, 128)
        best = None
        c = c_base
        while c <= C:
            if C % c == 0 and 2 * _padded_tile_bytes(c * HW, O_pad, w_item) <= w1e_budget:
                best = c
            c += c_base
        if best is None:
            # TODO(synk): no C-aligned split fits; keep W1e resident and rely on
            # vmem_limit_bytes (only hit for tiny C with very large HW).
            tile_k, k_tiles = K, 1
        else:
            tile_k, k_tiles = best * HW, C // best

    # ---- N tiling (honest padded-footprint accounting) ----------------------
    fixed = (2 * _padded_tile_bytes(tile_k, O_pad, w_item)        # W1e (x2 buffers)
             + 2 * _padded_tile_bytes(O_pad, O_pad, w_item)       # w2  (x2 buffers)
             + 4 * _padded_tile_bytes(1, O_pad, 4))               # b1, b2
    per_row = (2 * _round_up(tile_k, 128) * x_item                # x   (x2 buffers)
               + 2 * O_pad * 4                                    # out (x2 buffers)
               + O_pad * 4)                                       # f32 accumulator
    slack = 4 << 20
    avail = max(vmem_limit_bytes - fixed - slack, per_row * 8)
    tile_n_vmem = max(8, (avail // per_row) // 8 * 8)

    if tile_n is None:
        # >= ~8 N-steps so v7x can shard across its 2 TCs and still double-buffer.
        tile_n = min(tile_n_vmem, max(8, _round_up(_cdiv(N, 8), 8)))
    if N <= tile_n:
        tile_n = N                      # single full-extent block (any N is legal)
    n_tiles = _cdiv(N, tile_n)          # boundary block (if any) is masked by Pallas

    # ---- one-time parameter prep --------------------------------------------
    # Fold 1/HW into w1 and expand over the HW axis so x2d @ W1e == mean(x) @ w1
    # exactly; zero-pad O to a lane-dense multiple of 128 (padded hidden cols are
    # relu(0)=0 and padded w2 rows/cols are 0, so padding is exact).
    x2d = x_nchw.reshape(N, K)                                    # free view of NCHW
    w1e = jnp.repeat(w1.astype(jnp.float32) * (1.0 / HW), HW, axis=0)
    w1e = jnp.pad(w1e, ((0, 0), (0, O_pad - O))).astype(w_dtype)
    w2p = jnp.pad(w2, ((0, O_pad - O), (0, O_pad - O))).astype(w_dtype)
    b1p = jnp.pad(b1.reshape(1, O).astype(jnp.float32), ((0, 0), (0, O_pad - O)))
    b2p = jnp.pad(b2.reshape(1, O).astype(jnp.float32), ((0, 0), (0, O_pad - O)))
    # TODO(synk): if activations tolerate bf16, pass x as bf16 at the call
    # boundary -- weights follow x's dtype, the MXU still accumulates in f32,
    # and x HBM traffic (the only real cost of this kernel) halves.

    flops = 2 * N * K * O_pad + 2 * N * O_pad * O_pad
    bytes_accessed = (N * K * x_item
                      + n_tiles * k_tiles * tile_k * O_pad * w_item
                      + N * O_pad * 4)

    out = pl.pallas_call(
        roi_head_kernel,
        out_shape=jax.ShapeDtypeStruct((N, O_pad), jnp.float32),
        grid_spec=pltpu.PrefetchScalarGridSpec(
            num_scalar_prefetch=0,
            grid=(n_tiles, k_tiles),
            in_specs=[
                pl.BlockSpec((tile_n, tile_k), lambda i, k: (i, k)),   # streamed x
                pl.BlockSpec((tile_k, O_pad), lambda i, k: (k, 0)),    # W1e (resident if k_tiles == 1)
                pl.BlockSpec((1, O_pad), lambda i, k: (0, 0)),         # resident b1
                pl.BlockSpec((O_pad, O_pad), lambda i, k: (0, 0)),     # resident w2
                pl.BlockSpec((1, O_pad), lambda i, k: (0, 0)),         # resident b2
            ],
            out_specs=pl.BlockSpec((tile_n, O_pad), lambda i, k: (i, 0)),
            scratch_shapes=[pltpu.VMEM((tile_n, O_pad), jnp.float32)],
        ),
        compiler_params=pltpu.CompilerParams(
            dimension_semantics=("parallel", "arbitrary"),
            vmem_limit_bytes=vmem_limit_bytes,
        ),
        cost_estimate=pl.CostEstimate(flops=flops, transcendentals=0,
                                      bytes_accessed=bytes_accessed),
    )(x2d, w1e, b1p, w2p, b2p)

    return out[:, :O]


if __name__ == "__main__":
    # Small, module-consistent shapes:
    #   in_channels = 32, args.mask_head_out_channel = 16, batch = 2, spatial = 8x8
    N, C, H, W = 2, 32, 8, 8
    O = 16

    key = jax.random.PRNGKey(0)
    kx, kw1, kb1, kw2, kb2 = jax.random.split(key, 5)

    x = jax.random.normal(kx, (N, C, H, W), dtype=jnp.float32)

    # Deterministic synthetic parameters (torch Linear stores (out,in); we store transposed).
    w1 = jax.random.normal(kw1, (C, O), dtype=jnp.float32) * 0.05
    b1 = jax.random.normal(kb1, (O,), dtype=jnp.float32) * 0.05
    w2 = jax.random.normal(kw2, (O, O), dtype=jnp.float32) * 0.05
    b2 = jax.random.normal(kb2, (O,), dtype=jnp.float32) * 0.05

    out = roi_head_forward(x, w1, b1, w2, b2)
    out = jax.block_until_ready(out)

    # Pure-JAX reference matching the PyTorch forward semantics.
    pooled_ref = jnp.mean(x, axis=(2, 3))                       # (N, C)
    h_ref = jnp.maximum(pooled_ref @ w1 + b1, 0.0)              # (N, O)
    ref = h_ref @ w2 + b2                                       # (N, O)

    assert out.shape == (N, O)
    assert jnp.allclose(out, ref, atol=1e-4, rtol=1e-3), "mismatch vs reference"

    print("KERNEL_OK")
</pallas_src>

<mosaic_0001>
module attributes {stable_mosaic.version = 11 : i64} {
  func.func @roi_head_kernel(%arg0: i32, %arg1: i32, %arg2: memref<2x2048xf32, #tpu.memory_space<vmem>>, %arg3: memref<2048x128xf32, #tpu.memory_space<vmem>>, %arg4: memref<1x128xf32, #tpu.memory_space<vmem>>, %arg5: memref<128x128xf32, #tpu.memory_space<vmem>>, %arg6: memref<1x128xf32, #tpu.memory_space<vmem>>, %arg7: memref<2x128xf32, #tpu.memory_space<vmem>>, %arg8: memref<2x128xf32, #tpu.memory_space<vmem>>) attributes {dimension_semantics = [#tpu.dimension_semantics<parallel>, #tpu.dimension_semantics<arbitrary>], iteration_bounds = array<i64: 1, 1>, scalar_prefetch = 0 : i64, scratch_operands = 1 : i64, tpu.core_type = #tpu.core_type<tc>, window_params = [{transform_indices = @transform_0, window_bounds = array<i64: 2, 2048>}, {transform_indices = @transform_1, window_bounds = array<i64: 2048, 128>}, {pipeline_mode = #tpu.pipeline_mode<synchronous>, transform_indices = @transform_2, window_bounds = array<i64: 1, 128>}, {pipeline_mode = #tpu.pipeline_mode<synchronous>, transform_indices = @transform_3, window_bounds = array<i64: 128, 128>}, {pipeline_mode = #tpu.pipeline_mode<synchronous>, transform_indices = @transform_4, window_bounds = array<i64: 1, 128>}, {transform_indices = @transform_5, window_bounds = array<i64: 2, 128>}]} {
    %c0_i32 = arith.constant 0 : i32
    %0 = arith.cmpi eq, %arg1, %c0_i32 : i32
    %1 = arith.extui %0 : i1 to i32
    %c0_i32_0 = arith.constant 0 : i32
    %2 = arith.cmpi ne, %1, %c0_i32_0 : i32
    scf.if %2 {
      %cst_10 = arith.constant 0.000000e+00 : f32
      %12 = vector.broadcast %cst_10 : f32 to vector<2x128xf32>
      %c0_11 = arith.constant 0 : index
      %c0_12 = arith.constant 0 : index
      %13 = vector.load %arg8[%c0_11, %c0_12] : memref<2x128xf32, #tpu.memory_space<vmem>>, vector<2x128xf32>
      tpu.vector_store %arg8[%c0_11, %c0_12], %12 {strides = array<i32>} : memref<2x128xf32, #tpu.memory_space<vmem>>, vector<2x128xf32>,
    } else {
    }
    %c0 = arith.constant 0 : index
    %c0_1 = arith.constant 0 : index
    %3 = vector.load %arg8[%c0, %c0_1] : memref<2x128xf32, #tpu.memory_space<vmem>>, vector<2x128xf32>
    %c0_2 = arith.constant 0 : index
    %c0_3 = arith.constant 0 : index
    %4 = vector.load %arg2[%c0_2, %c0_3] : memref<2x2048xf32, #tpu.memory_space<vmem>>, vector<2x2048xf32>
    %c0_4 = arith.constant 0 : index
    %c0_5 = arith.constant 0 : index
    %5 = vector.load %arg3[%c0_4, %c0_5] : memref<2048x128xf32, #tpu.memory_space<vmem>>, vector<2048x128xf32>
    %cst = arith.constant dense<0.000000e+00> : vector<2x128xf32>
    %6 = tpu.matmul %4, %5, %cst {dimension_numbers = #tpu.dot_dimension_numbers<[1], [0], [0], [1], [0, 0, 1, 1], [], []>} : vector<2x2048xf32>, vector<2048x128xf32>, vector<2x128xf32> -> vector<2x128xf32>
    %7 = arith.addf %3, %6 : vector<2x128xf32>
    %c0_6 = arith.constant 0 : index
    %c0_7 = arith.constant 0 : index
    %8 = vector.load %arg8[%c0_6, %c0_7] : memref<2x128xf32, #tpu.memory_space<vmem>>, vector<2x128xf32>
    tpu.vector_store %arg8[%c0_6, %c0_7], %7 {strides = array<i32>} : memref<2x128xf32, #tpu.memory_space<vmem>>, vector<2x128xf32>,
    %c0_i32_8 = arith.constant 0 : i32
    %9 = arith.cmpi eq, %arg1, %c0_i32_8 : i32
    %10 = arith.extui %9 : i1 to i32
    %c0_i32_9 = arith.constant 0 : i32
    %11 = arith.cmpi ne, %10, %c0_i32_9 : i32
    scf.if %11 {
      %c0_10 = arith.constant 0 : index
      %c0_11 = arith.constant 0 : index
      %12 = vector.load %arg8[%c0_10, %c0_11] : memref<2x128xf32, #tpu.memory_space<vmem>>, vector<2x128xf32>
      %c0_12 = arith.constant 0 : index
      %c0_13 = arith.constant 0 : index
      %13 = vector.load %arg4[%c0_12, %c0_13] : memref<1x128xf32, #tpu.memory_space<vmem>>, vector<1x128xf32>
      %14 = vector.broadcast %13 : vector<1x128xf32> to vector<2x128xf32>
      %15 = arith.addf %12, %14 : vector<2x128xf32>
      %cst_14 = arith.constant 0.000000e+00 : f32
      %16 = vector.broadcast %cst_14 : f32 to vector<2x128xf32>
      %17 = arith.maximumf %15, %16 : vector<2x128xf32>
      %c0_15 = arith.constant 0 : index
      %c0_16 = arith.constant 0 : index
      %18 = vector.load %arg5[%c0_15, %c0_16] : memref<128x128xf32, #tpu.memory_space<vmem>>, vector<128x128xf32>
      %cst_17 = arith.constant dense<0.000000e+00> : vector<2x128xf32>
      %19 = tpu.matmul %17, %18, %cst_17 {dimension_numbers = #tpu.dot_dimension_numbers<[1], [0], [0], [1], [0, 0, 1, 1], [], []>} : vector<2x128xf32>, vector<128x128xf32>, vector<2x128xf32> -> vector<2x128xf32>
      %c0_18 = arith.constant 0 : index
      %c0_19 = arith.constant 0 : index
      %20 = vector.load %arg6[%c0_18, %c0_19] : memref<1x128xf32, #tpu.memory_space<vmem>>, vector<1x128xf32>
      %21 = vector.broadcast %20 : vector<1x128xf32> to vector<2x128xf32>
      %22 = arith.addf %19, %21 : vector<2x128xf32>
      %c0_20 = arith.constant 0 : index
      %c0_21 = arith.constant 0 : index
      %23 = vector.load %arg7[%c0_20, %c0_21] : memref<2x128xf32, #tpu.memory_space<vmem>>, vector<2x128xf32>
      tpu.vector_store %arg7[%c0_20, %c0_21], %22 {strides = array<i32>} : memref<2x128xf32, #tpu.memory_space<vmem>>, vector<2x128xf32>,
    } else {
    }
    return
  }
  func.func @transform_0(%arg0: i32, %arg1: i32) -> (i32, i32) {
    %c0_i32 = arith.constant 0 : i32
    return %arg0, %arg1 : i32, i32
  }
  func.func @transform_1(%arg0: i32, %arg1: i32) -> (i32, i32) {
    %c0_i32 = arith.constant 0 : i32
    %c0_i32_0 = arith.constant 0 : i32
    return %arg1, %c0_i32 : i32, i32
  }
  func.func @transform_2(%arg0: i32, %arg1: i32) -> (i32, i32) {
    %c0_i32 = arith.constant 0 : i32
    %c0_i32_0 = arith.constant 0 : i32
    %c0_i32_1 = arith.constant 0 : i32
    return %c0_i32, %c0_i32_0 : i32, i32
  }
  func.func @transform_3(%arg0: i32, %arg1: i32) -> (i32, i32) {
    %c0_i32 = arith.constant 0 : i32
    %c0_i32_0 = arith.constant 0 : i32
    %c0_i32_1 = arith.constant 0 : i32
    return %c0_i32, %c0_i32_0 : i32, i32
  }
  func.func @transform_4(%arg0: i32, %arg1: i32) -> (i32, i32) {
    %c0_i32 = arith.constant 0 : i32
    %c0_i32_0 = arith.constant 0 : i32
    %c0_i32_1 = arith.constant 0 : i32
    return %c0_i32, %c0_i32_0 : i32, i32
  }
  func.func @transform_5(%arg0: i32, %arg1: i32) -> (i32, i32) {
    %c0_i32 = arith.constant 0 : i32
    %c0_i32_0 = arith.constant 0 : i32
    return %arg0, %c0_i32 : i32, i32
  }
}

</mosaic_0001>

<bundles_post_ra>
// kernel: tpu_custom_call.1
= control target key start
LH: loop header
LB: loop body
LE: loop exit
PB: predicated region body
PF: predicated region fallthrough
CT: control target
= control target key end

     0   :  { %10 = vsyncpa [#allocation4], 0  ;;  %s2047_s0 = inlined_call_operand.hbm [shape: f32[2,2048], index: 0, kind: input, shape index: {}]   ;;  %s2048_s1 = inlined_call_operand.hbm [shape: f32[2048,128], index: 1, kind: input, shape index: {}]   ;;  %s2049_s2 = inlined_call_operand.hbm [shape: f32[1,128], index: 2, kind: input, shape index: {}]   ;;  %s2050_s3 = inlined_call_operand.hbm [shape: f32[128,128], index: 3, kind: input, shape index: {}]   ;;  %s2051_s4 = inlined_call_operand.hbm [shape: f32[1,128], index: 4, kind: input, shape index: {}]   ;;  %s2052_s5 = inlined_call_operand.hbm [shape: f32[2,128], index: 5, kind: output, shape index: {}]  }
   0x1   :  { %11 = vsyncpa [#allocation7], 0 }
   0x2   :  { %12 = vsyncpa [#allocation10], 0 }
   0x3   :  { %13 = vsyncpa [#allocation5], 0  ;;  %s1893_s18 = smov [#allocation6]   ;;  %s1753_s22 = scalar_lea.hbm %s2048_s1, 32768 }
   0x4   :  { %s29_s19 = sshll.u32 %s1893_s18, 4  ;;  %p1754_p0 = scmp.ne.s32.totalorder %s2048_s1, %s1753_s22  ;;  %s30_s19 = int_to_ptr.vmem [resolvable:$true] %s29_s19 }
   0x5   :  { %p1757_p1 = scmp.lt.u32.totalorder %s1753_s22, %s2048_s1 }
   0x7   :  { %p1759_p2 = pnand %p1757_p1, %p1754_p0 }
   0x9   :  { %1762 = shalt.err (!%p1759_p2)
}
   0xa   :  { %s1763_s27 = scalar_lea.vmem %s30_s19, 32768  ;;  %p1768_p4 = scmp.lt.s32.totalorder %s30_s19, %s30_s19 }
   0xb   :  { %p1764_p3 = scmp.ne.s32.totalorder %s30_s19, %s1763_s27  ;;  %p1769_p5 = scmp.lt.s32.totalorder %s1763_s27, %s1763_s27 }
   0xd   :  { %p1770_p6 = por %p1769_p5, %p1768_p4 }
   0xf   :  { %p1771_p7 = pnand %p1770_p6, %p1764_p3 }
  0x11   :  { %1774 = shalt.err (!%p1771_p7)
}
  0x12   :  { %s1894_s28 = smov 128   ;;  %s1895_s29 = smov 8  }
  0x13   :  { %35 = dma.hbm_to_vmem [thread:$0]  %s2048_s1, 32768, %s30_s19, [#allocation7], %s1894_s28, %s1894_s28, %s1895_s29  }
  0x14   :  { %s1896_s7 = smov [#allocation9]   ;;  %s1897_s9 = smov [#allocation3]  }
  0x15   :  { %s51_s8 = sshll.u32 %s1896_s7, 4  ;;  %s20_s10 = sshll.u32 %s1897_s9, 4  ;;  %s52_s8 = int_to_ptr.vmem [resolvable:$true] %s51_s8  ;;  %s21_s10 = int_to_ptr.vmem [resolvable:$true] %s20_s10 }
  0x16   :  { %s1775_s13 = scalar_lea.hbm %s2050_s3, 2048 }
  0x17   :  { %p1776_p8 = scmp.ne.s32.totalorder %s2050_s3, %s1775_s13  ;;  %p1779_p9 = scmp.lt.u32.totalorder %s1775_s13, %s2050_s3 }
  0x19   :  { %p1781_p10 = pnand %p1779_p9, %p1776_p8 }
  0x1b   :  { %1784 = shalt.err (!%p1781_p10)
}
  0x1c   :  { %s1785_s1 = scalar_lea.vmem %s52_s8, 2048  ;;  %p1790_p12 = scmp.lt.s32.totalorder %s52_s8, %s52_s8 }
  0x1d   :  { %p1786_p11 = scmp.ne.s32.totalorder %s52_s8, %s1785_s1  ;;  %p1791_p13 = scmp.lt.s32.totalorder %s1785_s1, %s1785_s1 }
  0x1f   :  { %p1792_p0 = por %p1791_p13, %p1790_p12 }
  0x21   :  { %p1793_p1 = pnand %p1792_p0, %p1786_p11 }
  0x23   :  { %1796 = shalt.err (!%p1793_p1)
}
  0x24   :  { %57 = dma.hbm_to_vmem [thread:$0]  %s2050_s3, 2048, %s52_s8, [#allocation10], %s1894_s28, %s1894_s28, %s1895_s29  }
  0x25   :  { %s1797_s22 = scalar_lea.hbm %s2047_s0, 512 }
  0x26   :  { %p1798_p2 = scmp.ne.s32.totalorder %s2047_s0, %s1797_s22  ;;  %p1801_p3 = scmp.lt.u32.totalorder %s1797_s22, %s2047_s0 }
  0x28   :  { %p1803_p4 = pnand %p1801_p3, %p1798_p2 }
  0x2a   :  { %1806 = shalt.err (!%p1803_p4)
}
  0x2b   :  { %s1807_s27 = scalar_lea.vmem %s21_s10, 512  ;;  %p1812_p6 = scmp.lt.s32.totalorder %s21_s10, %s21_s10 }
  0x2c   :  { %p1808_p5 = scmp.ne.s32.totalorder %s21_s10, %s1807_s27  ;;  %p1813_p7 = scmp.lt.s32.totalorder %s1807_s27, %s1807_s27 }
  0x2e   :  { %p1814_p8 = por %p1813_p7, %p1812_p6 }
  0x30   :  { %p1815_p9 = pnand %p1814_p8, %p1808_p5 }
  0x32   :  { %1818 = shalt.err (!%p1815_p9)
}
  0x33   :  { %23 = dma.hbm_to_vmem [thread:$0]  %s2047_s0, 512, %s21_s10, [#allocation4]  }
  0x34   :  { %s1898_s29 = smov [#allocation8]   ;;  %s1899_s6 = smov [#allocation11]  }
  0x35   :  { %s42_s30 = sshll.u32 %s1898_s29, 4  ;;  %s64_s7 = sshll.u32 %s1899_s6, 4  ;;  %s43_s30 = int_to_ptr.vmem [resolvable:$true] %s42_s30  ;;  %s65_s7 = int_to_ptr.vmem [resolvable:$true] %s64_s7 }
  0x36   :  { %s1819_s11 = scalar_lea.hbm %s2049_s2, 16 }
  0x37   :  { %p1820_p10 = scmp.ne.s32.totalorder %s2049_s2, %s1819_s11  ;;  %p1823_p11 = scmp.lt.u32.totalorder %s1819_s11, %s2049_s2 }
  0x39   :  { %p1825_p12 = pnand %p1823_p11, %p1820_p10 }
  0x3b   :  { %1828 = shalt.err (!%p1825_p12)
}
  0x3c   :  { %s1829_s0 = scalar_lea.vmem %s43_s30, 16  ;;  %s1833_s10 = scalar_lea.vmem %s43_s30, 32 }
  0x3d   :  { %p1830_p13 = scmp.ne.s32.totalorder %s43_s30, %s1829_s0  ;;  %p1834_p0 = scmp.lt.s32.totalorder %s43_s30, %s43_s30 }
  0x3e   :  { %p1835_p1 = scmp.lt.s32.totalorder %s1833_s10, %s1829_s0 }
  0x40   :  { %p1836_p2 = por %p1835_p1, %p1834_p0 }
  0x42   :  { %p1837_p3 = pnand %p1836_p2, %p1830_p13 }
  0x44   :  { %1840 = shalt.err (!%p1837_p3)
}
  0x45   :  { %45 = dma.hbm_to_vmem [thread:$0]  %s2049_s2, 16, %s43_s30, [#allocation7]  }
  0x46   :  { %s1841_s19 = scalar_lea.hbm %s2051_s4, 16 }
  0x47   :  { %p1842_p4 = scmp.ne.s32.totalorder %s2051_s4, %s1841_s19  ;;  %p1845_p5 = scmp.lt.u32.totalorder %s1841_s19, %s2051_s4 }
  0x49   :  { %p1847_p6 = pnand %p1845_p5, %p1842_p4 }
  0x4b   :  { %1850 = shalt.err (!%p1847_p6)
}
  0x4c   :  { %s1851_s24 = scalar_lea.vmem %s65_s7, 16  ;;  %s1855_s25 = scalar_lea.vmem %s65_s7, 32 }
  0x4d   :  { %p1852_p7 = scmp.ne.s32.totalorder %s65_s7, %s1851_s24  ;;  %p1856_p8 = scmp.lt.s32.totalorder %s65_s7, %s65_s7 }
  0x4e   :  { %p1857_p9 = scmp.lt.s32.totalorder %s1855_s25, %s1851_s24 }
  0x50   :  { %p1858_p10 = por %p1857_p9, %p1856_p8 }
  0x52   :  { %p1859_p11 = pnand %p1858_p10, %p1852_p7 }
  0x54   :  { %1862 = shalt.err (!%p1859_p11)
}
  0x55   :  { %67 = dma.hbm_to_vmem [thread:$0]  %s2051_s4, 16, %s65_s7, [#allocation10]  }
  0x56   :  { %1885 = dma.done.wait [#allocation4], 512  }
  0x57   :  { %1886 = vsyncadd [#allocation4], 4294966784 }
  0x58   :  { %1887 = dma.done.wait [#allocation7], 32784  }
  0x59   :  { %1888 = vsyncadd [#allocation7], 4294934512 }
  0x5a   :  { %1889 = dma.done.wait [#allocation10], 2064  }
  0x5b   :  { %1890 = vsyncadd [#allocation10], 4294965232  ;;  %v109_v0 = vld [vmem:[#allocation6 + $0x80] sm:$0xff]  ;;  %v110_v1 = vld [vmem:[#allocation6 + $0x88] sm:$0xff]  ;;  %v1900_v47 = vmov 1983009808   ;;  %v357_v49 = vlaneseq }
  0x5c   :  { %v141_v2 = vld [vmem:[#allocation6 + $0x180] sm:$0xff]  ;;  %v1457_v3 = vpack.c.bf16 %v110_v1, %v109_v0  ;;  %v142_v4 = vld [vmem:[#allocation6 + $0x188] sm:$0xff]  ;;  %v111_v11 = vld [vmem:[#allocation6 + $0x90] sm:$0xff]  ;;  %v355_v48 = vunpack.c.l.s4 %v1900_v47  ;;  %vm1903_vm0 = vmmov 0   ;;  %s1904_s4 = smov [#allocation12]  }
  0x5d   :  { %v93_v5 = vld [vmem:[#allocation6] sm:$0xff]  ;;  %v94_v6 = vld [vmem:[#allocation6 + $0x8] sm:$0xff]  ;;  %v1489_v7 = vpack.c.bf16 %v142_v4, %v141_v2  ;;  %v112_v13 = vld [vmem:[#allocation6 + $0x98] sm:$0xff]  ;;  %v358_v0 = vshrl.u32 %v357_v49, 7  ;;  %s1112_s27 = sshll.u32 %s1904_s4, 4  ;;  %s1113_s27 = int_to_ptr.vmem [resolvable:$true] %s1112_s27 }
  0x5e   :  { %v1459_v8 = vpack.c.bf16 %v94_v6, %v93_v5  ;;  %v125_v9 = vld [vmem:[#allocation6 + $0x100] sm:$0xff]  ;;  %v126_v10 = vld [vmem:[#allocation6 + $0x108] sm:$0xff]  ;;  %1458 = vmatprep.subr.bf16.mxu0 %v1457_v3  ;;  %v143_v14 = vld [vmem:[#allocation6 + $0x190] sm:$0xff]  ;;  %v1461_v16 = vpack.c.bf16 %v112_v13, %v111_v11  ;;  %v356_v63 = vunpack.c.0.s8 %v355_v48  ;;  %s1863_s3 = scalar_lea.vmem %s1113_s27, 32  ;;  %p1868_p13 = scmp.lt.s32.totalorder %s1113_s27, %s1113_s27 }
  0x5f   :  { %v1491_v12 = vpack.c.bf16 %v126_v10, %v125_v9  ;;  %v144_v15 = vld [vmem:[#allocation6 + $0x198] sm:$0xff]  ;;  %1490 = vmatprep.subr.bf16.mxu1 %v1489_v7  ;;  %v95_v18 = vld [vmem:[#allocation6 + $0x10] sm:$0xff]  ;;  %v113_v23 = vld [vmem:[#allocation6 + $0xa0] sm:$0xff]  ;;  %p1864_p12 = scmp.ne.s32.totalorder %s1113_s27, %s1863_s3  ;;  %p1869_p0 = scmp.lt.s32.totalorder %s1863_s3, %s1863_s3 }
  0x60   :  { %1460 = vmatpush3.bf16.msra.mxu0 %v1459_v8  ;;  %v1493_v17 = vpack.c.bf16 %v144_v15, %v143_v14  ;;  %v96_v19 = vld [vmem:[#allocation6 + $0x18] sm:$0xff]  ;;  %v127_v20 = vld [vmem:[#allocation6 + $0x110] sm:$0xff]  ;;  %v114_v24 = vld [vmem:[#allocation6 + $0xa8] sm:$0xff]  ;;  %v1995_v13 = vsub.s32 %v356_v63, %v358_v0 }
  0x61   :  { %1492 = vmatpush3.bf16.msra.mxu1 %v1491_v12  ;;  %v1463_v21 = vpack.c.bf16 %v96_v19, %v95_v18  ;;  %v128_v22 = vld [vmem:[#allocation6 + $0x118] sm:$0xff]  ;;  %1462 = vmatprep.subr.bf16.mxu0 %v1461_v16  ;;  %v1465_v26 = vpack.c.bf16 %v114_v24, %v113_v23  ;;  %v145_v27 = vld [vmem:[#allocation6 + $0x1a0] sm:$0xff]  ;;  %v146_v28 = vld [vmem:[#allocation6 + $0x1a8] sm:$0xff]  ;;  %p1870_p1 = por %p1869_p0, %p1868_p13 }
  0x62   :  { %1494 = vmatprep.subr.bf16.mxu1 %v1493_v17  ;;  %v1495_v25 = vpack.c.bf16 %v128_v22, %v127_v20  ;;  %v97_v29 = vld [vmem:[#allocation6 + $0x20] sm:$0xff]  ;;  %v1497_v30 = vpack.c.bf16 %v146_v28, %v145_v27  ;;  %v98_v31 = vld [vmem:[#allocation6 + $0x28] sm:$0xff]  ;;  %v115_v35 = vld [vmem:[#allocation6 + $0xb0] sm:$0xff] }
  0x63   :  { %v129_v32 = vld [vmem:[#allocation6 + $0x120] sm:$0xff]  ;;  %v130_v33 = vld [vmem:[#allocation6 + $0x128] sm:$0xff]  ;;  %v1467_v34 = vpack.c.bf16 %v98_v31, %v97_v29  ;;  %v116_v36 = vld [vmem:[#allocation6 + $0xb8] sm:$0xff]  ;;  %p1871_p2 = pnand %p1870_p1, %p1864_p12 }
  0x64   :  { %1464 = vmatpush3.bf16.msra.mxu0 %v1463_v21  ;;  %v147_v37 = vld [vmem:[#allocation6 + $0x1b0] sm:$0xff]  ;;  %v1499_v38 = vpack.c.bf16 %v130_v33, %v129_v32  ;;  %v1469_v39 = vpack.c.bf16 %v116_v36, %v115_v35  ;;  %v148_v40 = vld [vmem:[#allocation6 + $0x1b8] sm:$0xff]  ;;  %v117_v46 = vld [vmem:[#allocation6 + $0xc0] sm:$0xff] }
  0x65   :  { %1496 = vmatpush3.bf16.msra.mxu1 %v1495_v25  ;;  %1466 = vmatprep.subr.bf16.mxu0 %v1465_v26  ;;  %v99_v41 = vld [vmem:[#allocation6 + $0x30] sm:$0xff]  ;;  %v100_v42 = vld [vmem:[#allocation6 + $0x38] sm:$0xff]  ;;  %v1501_v43 = vpack.c.bf16 %v148_v40, %v147_v37  ;;  %v118_v50 = vld [vmem:[#allocation6 + $0xc8] sm:$0xff] }
  0x66   :  { %1498 = vmatprep.subr.bf16.mxu1 %v1497_v30  ;;  %v131_v44 = vld [vmem:[#allocation6 + $0x130] sm:$0xff]  ;;  %v132_v45 = vld [vmem:[#allocation6 + $0x138] sm:$0xff]  ;;  %v149_v51 = vld [vmem:[#allocation6 + $0x1c0] sm:$0xff]  ;;  %v1471_v53 = vpack.c.bf16 %v100_v42, %v99_v41  ;;  %v1473_v55 = vpack.c.bf16 %v118_v50, %v117_v46 }
  0x67   :  { %v150_v52 = vld [vmem:[#allocation6 + $0x1c8] sm:$0xff]  ;;  %v1503_v54 = vpack.c.bf16 %v132_v45, %v131_v44  ;;  %v101_v56 = vld [vmem:[#allocation6 + $0x40] sm:$0xff]  ;;  %v119_v61 = vld [vmem:[#allocation6 + $0xd0] sm:$0xff] }
  0x68   :  { %1468 = vmatpush3.bf16.msra.mxu0 %v1467_v34  ;;  %v102_v57 = vld [vmem:[#allocation6 + $0x48] sm:$0xff]  ;;  %v133_v58 = vld [vmem:[#allocation6 + $0x140] sm:$0xff]  ;;  %v1505_v59 = vpack.c.bf16 %v150_v52, %v149_v51  ;;  %v120_v62 = vld [vmem:[#allocation6 + $0xd8] sm:$0xff] }
  0x69   :  { %1500 = vmatpush3.bf16.msra.mxu1 %v1499_v38  ;;  %1470 = vmatprep.subr.bf16.mxu0 %v1469_v39  ;;  %v134_v60 = vld [vmem:[#allocation6 + $0x148] sm:$0xff]  ;;  %v151_v1 = vld [vmem:[#allocation6 + $0x1d0] sm:$0xff]  ;;  %v152_v2 = vld [vmem:[#allocation6 + $0x1d8] sm:$0xff]  ;;  %v1475_v3 = vpack.c.bf16 %v102_v57, %v101_v56  ;;  %v1477_v5 = vpack.c.bf16 %v120_v62, %v119_v61 }
  0x6a   :  { %1502 = vmatprep.subr.bf16.mxu1 %v1501_v43  ;;  %v1507_v4 = vpack.c.bf16 %v134_v60, %v133_v58  ;;  %v103_v6 = vld [vmem:[#allocation6 + $0x50] sm:$0xff]  ;;  %v104_v7 = vld [vmem:[#allocation6 + $0x58] sm:$0xff]  ;;  %v1509_v9 = vpack.c.bf16 %v152_v2, %v151_v1  ;;  %v121_v11 = vld [vmem:[#allocation6 + $0xe0] sm:$0xff] }
  0x6b   :  { %v135_v8 = vld [vmem:[#allocation6 + $0x150] sm:$0xff]  ;;  %v136_v10 = vld [vmem:[#allocation6 + $0x158] sm:$0xff]  ;;  %v122_v12 = vld [vmem:[#allocation6 + $0xe8] sm:$0xff]  ;;  %v1479_v16 = vpack.c.bf16 %v104_v7, %v103_v6 }
  0x6c   :  { %1472 = vmatpush3.bf16.msra.mxu0 %v1471_v53  ;;  %v153_v14 = vld [vmem:[#allocation6 + $0x1e0] sm:$0xff]  ;;  %v154_v15 = vld [vmem:[#allocation6 + $0x1e8] sm:$0xff]  ;;  %v1511_v18 = vpack.c.bf16 %v136_v10, %v135_v8  ;;  %v1481_v19 = vpack.c.bf16 %v122_v12, %v121_v11  ;;  %v123_v25 = vld [vmem:[#allocation6 + $0xf0] sm:$0xff] }
  0x6d   :  { %1504 = vmatpush3.bf16.msra.mxu1 %v1503_v54  ;;  %1474 = vmatprep.subr.bf16.mxu0 %v1473_v55  ;;  %v105_v17 = vld [vmem:[#allocation6 + $0x60] sm:$0xff]  ;;  %v106_v20 = vld [vmem:[#allocation6 + $0x68] sm:$0xff]  ;;  %v1513_v23 = vpack.c.bf16 %v154_v15, %v153_v14  ;;  %v124_v26 = vld [vmem:[#allocation6 + $0xf8] sm:$0xff] }
  0x6e   :  { %1506 = vmatprep.subr.bf16.mxu1 %v1505_v59  ;;  %v137_v21 = vld [vmem:[#allocation6 + $0x160] sm:$0xff]  ;;  %v138_v24 = vld [vmem:[#allocation6 + $0x168] sm:$0xff]  ;;  %v155_v29 = vld [vmem:[#allocation6 + $0x1f0] sm:$0xff]  ;;  %v1483_v31 = vpack.c.bf16 %v106_v20, %v105_v17  ;;  %v1485_v35 = vpack.c.bf16 %v124_v26, %v123_v25 }
  0x6f   :  { %v89_v22 = vld [vmem:[#allocation3] sm:$0xff]  ;;  %v156_v30 = vld [vmem:[#allocation6 + $0x1f8] sm:$0xff]  ;;  %v1515_v34 = vpack.c.bf16 %v138_v24, %v137_v21  ;;  %v107_v36 = vld [vmem:[#allocation6 + $0x70] sm:$0xff] }
  0x70   :  { %1476 = vmatpush3.bf16.msra.mxu0 %v1475_v3  ;;  %v360_v27 = vrot.slane %v89_v22, %v1995_v13  ;;  %v353_v28 = vcombine.high %v89_v22, %v89_v22  ;;  %v108_v37 = vld [vmem:[#allocation6 + $0x78] sm:$0xff]  ;;  %v139_v38 = vld [vmem:[#allocation6 + $0x170] sm:$0xff]  ;;  %v1517_v39 = vpack.c.bf16 %v156_v30, %v155_v29  ;;  %v173_v42 = vld [vmem:[#allocation6 + $0x280] sm:$0xff] }
  0x71   :  { %1508 = vmatpush3.bf16.msra.mxu1 %v1507_v4  ;;  %1478 = vmatprep.subr.bf16.mxu0 %v1477_v5  ;;  %v140_v40 = vld [vmem:[#allocation6 + $0x178] sm:$0xff]  ;;  %v174_v43 = vld [vmem:[#allocation6 + $0x288] sm:$0xff]  ;;  %v205_v44 = vld [vmem:[#allocation6 + $0x380] sm:$0xff]  ;;  %v1487_v46 = vpack.c.bf16 %v108_v37, %v107_v36 }
  0x72   :  { %1510 = vmatprep.subr.bf16.mxu1 %v1509_v9  ;;  %v368_v32 = vcombine.high %v360_v27, %v360_v27  ;;  %v367_v33 = vrot.slane %v353_v28, %v1995_v13  ;;  %v206_v45 = vld [vmem:[#allocation6 + $0x388] sm:$0xff]  ;;  %v1519_v47 = vpack.c.bf16 %v140_v40, %v139_v38  ;;  %v1521_v48 = vpack.c.bf16 %v174_v43, %v173_v42  ;;  %v157_v49 = vld [vmem:[#allocation6 + $0x200] sm:$0xff]  ;;  %v175_v54 = vld [vmem:[#allocation6 + $0x290] sm:$0xff] }
  0x73   :  { %v158_v50 = vld [vmem:[#allocation6 + $0x208] sm:$0xff]  ;;  %v189_v51 = vld [vmem:[#allocation6 + $0x300] sm:$0xff]  ;;  %v1553_v52 = vpack.c.bf16 %v206_v45, %v205_v44  ;;  %v176_v55 = vld [vmem:[#allocation6 + $0x298] sm:$0xff] }
  0x74   :  { %1480 = vmatpush3.bf16.msra.mxu0 %v1479_v16  ;;  %501 = vmatprep.mubr.f32.mxu0 %v368_v32  ;;  %v369_v41 = vcombine.high %v367_v33, %v367_v33  ;;  %v190_v53 = vld [vmem:[#allocation6 + $0x308] sm:$0xff]  ;;  %v207_v56 = vld [vmem:[#allocation6 + $0x390] sm:$0xff]  ;;  %v208_v57 = vld [vmem:[#allocation6 + $0x398] sm:$0xff]  ;;  %v1523_v58 = vpack.c.bf16 %v158_v50, %v157_v49  ;;  %v1525_v60 = vpack.c.bf16 %v176_v55, %v175_v54 }
  0x75   :  { %1512 = vmatpush3.bf16.msra.mxu1 %v1511_v18  ;;  %1482 = vmatprep.subr.bf16.mxu0 %v1481_v19  ;;  %v1555_v59 = vpack.c.bf16 %v190_v53, %v189_v51  ;;  %v159_v61 = vld [vmem:[#allocation6 + $0x210] sm:$0xff]  ;;  %v160_v62 = vld [vmem:[#allocation6 + $0x218] sm:$0xff]  ;;  %v1557_v0 = vpack.c.bf16 %v208_v57, %v207_v56  ;;  %v177_v2 = vld [vmem:[#allocation6 + $0x2a0] sm:$0xff] }
  0x76   :  { %1514 = vmatprep.subr.bf16.mxu1 %v1513_v23  ;;  %571 = vmatprep.mubr.f32.mxu1 %v369_v41  ;;  %v191_v63 = vld [vmem:[#allocation6 + $0x310] sm:$0xff]  ;;  %v192_v1 = vld [vmem:[#allocation6 + $0x318] sm:$0xff]  ;;  %v178_v3 = vld [vmem:[#allocation6 + $0x2a8] sm:$0xff]  ;;  %v1527_v6 = vpack.c.bf16 %v160_v62, %v159_v61 }
  0x77   :  { %v209_v4 = vld [vmem:[#allocation6 + $0x3a0] sm:$0xff]  ;;  %v210_v5 = vld [vmem:[#allocation6 + $0x3a8] sm:$0xff]  ;;  %v1559_v7 = vpack.c.bf16 %v192_v1, %v191_v63  ;;  %v1529_v8 = vpack.c.bf16 %v178_v3, %v177_v2  ;;  %v179_v15 = vld [vmem:[#allocation6 + $0x2b0] sm:$0xff] }
  0x78   :  { %1484 = vmatpush3.bf16.msra.mxu0 %v1483_v31  ;;  %v161_v9 = vld [vmem:[#allocation6 + $0x220] sm:$0xff]  ;;  %v162_v10 = vld [vmem:[#allocation6 + $0x228] sm:$0xff]  ;;  %v1561_v12 = vpack.c.bf16 %v210_v5, %v209_v4  ;;  %v180_v16 = vld [vmem:[#allocation6 + $0x2b8] sm:$0xff] }
  0x79   :  { %1516 = vmatpush3.bf16.msra.mxu1 %v1515_v34  ;;  %1486 = vmatprep.subr.bf16.mxu0 %v1485_v35  ;;  %v193_v11 = vld [vmem:[#allocation6 + $0x320] sm:$0xff]  ;;  %v194_v14 = vld [vmem:[#allocation6 + $0x328] sm:$0xff]  ;;  %v211_v17 = vld [vmem:[#allocation6 + $0x3b0] sm:$0xff]  ;;  %v1531_v19 = vpack.c.bf16 %v162_v10, %v161_v9  ;;  %v1533_v21 = vpack.c.bf16 %v180_v16, %v179_v15 }
  0x7a   :  { %1518 = vmatprep.subr.bf16.mxu1 %v1517_v39  ;;  %v212_v18 = vld [vmem:[#allocation6 + $0x3b8] sm:$0xff]  ;;  %v1563_v20 = vpack.c.bf16 %v194_v14, %v193_v11  ;;  %v163_v22 = vld [vmem:[#allocation6 + $0x230] sm:$0xff]  ;;  %v182_v28 = vld [vmem:[#allocation6 + $0x2c8] sm:$0xff] }
  0x7b   :  { %v164_v23 = vld [vmem:[#allocation6 + $0x238] sm:$0xff]  ;;  %v195_v24 = vld [vmem:[#allocation6 + $0x330] sm:$0xff]  ;;  %v1565_v25 = vpack.c.bf16 %v212_v18, %v211_v17  ;;  %v213_v29 = vld [vmem:[#allocation6 + $0x3c0] sm:$0xff] }
  0x7c   :  { %1488 = vmatpush3.bf16.msra.mxu0 %v1487_v46  ;;  %v196_v26 = vld [vmem:[#allocation6 + $0x338] sm:$0xff]  ;;  %v214_v30 = vld [vmem:[#allocation6 + $0x3c8] sm:$0xff]  ;;  %v1535_v32 = vpack.c.bf16 %v164_v23, %v163_v22  ;;  %v165_v37 = vld [vmem:[#allocation6 + $0x240] sm:$0xff] }
  0x7d   :  { %1520 = vmatpush3.bf16.msra.mxu1 %v1519_v47  ;;  %1522 = vmatprep.subr.bf16.mxu0 %v1521_v48  ;;  %v90_v31 = vld [vmem:[#allocation3 + $0x8] sm:$0xff]  ;;  %v1567_v35 = vpack.c.bf16 %v196_v26, %v195_v24  ;;  %v197_v39 = vld [vmem:[#allocation6 + $0x340] sm:$0xff]  ;;  %v1569_v40 = vpack.c.bf16 %v214_v30, %v213_v29  ;;  %v183_v42 = vld [vmem:[#allocation6 + $0x2d0] sm:$0xff] }
  0x7e   :  { %1554 = vmatprep.subr.bf16.mxu1 %v1553_v52  ;;  %v370_v34 = vcombine.high %v90_v31, %v90_v31  ;;  %v166_v38 = vld [vmem:[#allocation6 + $0x248] sm:$0xff]  ;;  %v184_v43 = vld [vmem:[#allocation6 + $0x2d8] sm:$0xff]  ;;  %v215_v46 = vld [vmem:[#allocation6 + $0x3d0] sm:$0xff] }
  0x7f   :  { %502 = vmatmul.mubr.f32.vlgmr.msra.gmra.mrb[0].mxu0 %v360_v27  ;;  %v181_v27 = vld [vmem:[#allocation6 + $0x2c0] sm:$0xff]  ;;  %v198_v41 = vld [vmem:[#allocation6 + $0x348] sm:$0xff]  ;;  %v216_v47 = vld [vmem:[#allocation6 + $0x3d8] sm:$0xff]  ;;  %v1539_v48 = vpack.c.bf16 %v166_v38, %v165_v37  ;;  %v1541_v51 = vpack.c.bf16 %v184_v43, %v183_v42 }
  0x80   :  { %572 = vmatmul.mubr.f32.vlgmr.msra.gmra.mrb[0].mxu1 %v367_v33  ;;  %1524 = vmatpush3.bf16.msra.mxu0 %v1523_v58  ;;  %v2000_v33 = vrot.slane %v90_v31, %v1995_v13  ;;  %v1537_v36 = vpack.c.bf16 %v182_v28, %v181_v27  ;;  %v2005_v45 = vrot.slane %v370_v34, %v1995_v13  ;;  %v167_v52 = vld [vmem:[#allocation6 + $0x250] sm:$0xff]  ;;  %v168_v53 = vld [vmem:[#allocation6 + $0x258] sm:$0xff]  ;;  %v185_v57 = vld [vmem:[#allocation6 + $0x2e0] sm:$0xff] }
  0x81   :  { %1556 = vmatpush3.bf16.msra.mxu1 %v1555_v59  ;;  %1526 = vmatprep.subr.bf16.mxu0 %v1525_v60  ;;  %v1571_v50 = vpack.c.bf16 %v198_v41, %v197_v39  ;;  %v199_v54 = vld [vmem:[#allocation6 + $0x350] sm:$0xff]  ;;  %v1573_v55 = vpack.c.bf16 %v216_v47, %v215_v46  ;;  %v200_v56 = vld [vmem:[#allocation6 + $0x358] sm:$0xff]  ;;  %v186_v58 = vld [vmem:[#allocation6 + $0x2e8] sm:$0xff]  ;;  %v1543_v61 = vpack.c.bf16 %v168_v53, %v167_v52 }
  0x82   :  { %1558 = vmatprep.subr.bf16.mxu1 %v1557_v0  ;;  %v385_v44 = vcombine.high %v2000_v33, %v2000_v33  ;;  %v386_v49 = vcombine.high %v2005_v45, %v2005_v45  ;;  %v217_v59 = vld [vmem:[#allocation6 + $0x3e0] sm:$0xff]  ;;  %v218_v60 = vld [vmem:[#allocation6 + $0x3e8] sm:$0xff]  ;;  %v1575_v62 = vpack.c.bf16 %v200_v56, %v199_v54  ;;  %v1545_v63 = vpack.c.bf16 %v186_v58, %v185_v57  ;;  %v187_v5 = vld [vmem:[#allocation6 + $0x2f0] sm:$0xff] }
  0x83   :  { %v169_v0 = vld [vmem:[#allocation6 + $0x260] sm:$0xff]  ;;  %v170_v1 = vld [vmem:[#allocation6 + $0x268] sm:$0xff]  ;;  %v1577_v3 = vpack.c.bf16 %v218_v60, %v217_v59  ;;  %v172_v14 = vld [vmem:[#allocation6 + $0x278] sm:$0xff] }
  0x84   :  { %1528 = vmatpush3.bf16.msra.mxu0 %v1527_v6  ;;  %641 = vmatprep.mubr.f32.mxu0 %v385_v44  ;;  %v201_v2 = vld [vmem:[#allocation6 + $0x360] sm:$0xff]  ;;  %v202_v4 = vld [vmem:[#allocation6 + $0x368] sm:$0xff]  ;;  %v188_v6 = vld [vmem:[#allocation6 + $0x2f8] sm:$0xff]  ;;  %v1547_v9 = vpack.c.bf16 %v170_v1, %v169_v0 }
  0x85   :  { %1560 = vmatpush3.bf16.msra.mxu1 %v1559_v7  ;;  %1530 = vmatprep.subr.bf16.mxu0 %v1529_v8  ;;  %v219_v7 = vld [vmem:[#allocation6 + $0x3f0] sm:$0xff]  ;;  %v220_v8 = vld [vmem:[#allocation6 + $0x3f8] sm:$0xff]  ;;  %v1579_v10 = vpack.c.bf16 %v202_v4, %v201_v2  ;;  %v1549_v11 = vpack.c.bf16 %v188_v6, %v187_v5  ;;  %v237_v18 = vld [vmem:[#allocation6 + $0x480] sm:$0xff] }
  0x86   :  { %1562 = vmatprep.subr.bf16.mxu1 %v1561_v12  ;;  %711 = vmatprep.mubr.f32.mxu1 %v386_v49  ;;  %v171_v12 = vld [vmem:[#allocation6 + $0x270] sm:$0xff]  ;;  %v1581_v16 = vpack.c.bf16 %v220_v8, %v219_v7  ;;  %v204_v17 = vld [vmem:[#allocation6 + $0x378] sm:$0xff]  ;;  %v221_v23 = vld [vmem:[#allocation6 + $0x400] sm:$0xff] }
  0x87   :  { %v203_v15 = vld [vmem:[#allocation6 + $0x370] sm:$0xff]  ;;  %v1551_v22 = vpack.c.bf16 %v172_v14, %v171_v12  ;;  %v222_v26 = vld [vmem:[#allocation6 + $0x408] sm:$0xff]  ;;  %v253_v27 = vld [vmem:[#allocation6 + $0x500] sm:$0xff] }
  0x88   :  { %1532 = vmatpush3.bf16.msra.mxu0 %v1531_v19  ;;  %v238_v19 = vld [vmem:[#allocation6 + $0x488] sm:$0xff]  ;;  %v1583_v24 = vpack.c.bf16 %v204_v17, %v203_v15  ;;  %v239_v30 = vld [vmem:[#allocation6 + $0x490] sm:$0xff]  ;;  %v240_v31 = vld [vmem:[#allocation6 + $0x498] sm:$0xff] }
  0x89   :  { %1564 = vmatpush3.bf16.msra.mxu1 %v1563_v20  ;;  %1534 = vmatprep.subr.bf16.mxu0 %v1533_v21  ;;  %v269_v20 = vld [vmem:[#allocation6 + $0x580] sm:$0xff]  ;;  %v270_v21 = vld [vmem:[#allocation6 + $0x588] sm:$0xff]  ;;  %v272_v34 = vld [vmem:[#allocation6 + $0x598] sm:$0xff]  ;;  %v1589_v38 = vpack.c.bf16 %v240_v31, %v239_v30 }
  0x8a   :  { %1566 = vmatprep.subr.bf16.mxu1 %v1565_v25  ;;  %v1585_v25 = vpack.c.bf16 %v238_v19, %v237_v18  ;;  %v254_v28 = vld [vmem:[#allocation6 + $0x508] sm:$0xff]  ;;  %v1617_v29 = vpack.c.bf16 %v270_v21, %v269_v20  ;;  %v91_v37 = vld [vmem:[#allocation3 + $0x10] sm:$0xff]  ;;  %v256_v46 = vld [vmem:[#allocation6 + $0x518] sm:$0xff] }
  0x8b   :  { %v223_v39 = vld [vmem:[#allocation6 + $0x410] sm:$0xff]  ;;  %v2010_v42 = vrot.slane %v91_v37, %v1995_v13  ;;  %v387_v43 = vcombine.high %v91_v37, %v91_v37  ;;  %v241_v47 = vld [vmem:[#allocation6 + $0x4a0] sm:$0xff]  ;;  %v226_v57 = vld [vmem:[#allocation6 + $0x428] sm:$0xff] }
  0x8c   :  { %1536 = vmatpush3.bf16.msra.mxu0 %v1535_v32  ;;  %v271_v32 = vld [vmem:[#allocation6 + $0x590] sm:$0xff]  ;;  %v273_v49 = vld [vmem:[#allocation6 + $0x5a0] sm:$0xff]  ;;  %v258_v60 = vld [vmem:[#allocation6 + $0x528] sm:$0xff] }
  0x8d   :  { %1568 = vmatpush3.bf16.msra.mxu1 %v1567_v35  ;;  %1538 = vmatprep.subr.bf16.mxu0 %v1537_v36  ;;  %v1587_v35 = vpack.c.bf16 %v222_v26, %v221_v23  ;;  %v1619_v36 = vpack.c.bf16 %v254_v28, %v253_v27  ;;  %v255_v41 = vld [vmem:[#allocation6 + $0x510] sm:$0xff]  ;;  %v1621_v44 = vpack.c.bf16 %v272_v34, %v271_v32  ;;  %v225_v56 = vld [vmem:[#allocation6 + $0x420] sm:$0xff]  ;;  %v276_v0 = vld [vmem:[#allocation6 + $0x5b8] sm:$0xff] }
  0x8e   :  { %1570 = vmatprep.subr.bf16.mxu1 %v1569_v40  ;;  %v224_v40 = vld [vmem:[#allocation6 + $0x418] sm:$0xff]  ;;  %v2016_v52 = vrot.slane %v387_v43, %v1995_v13  ;;  %v1623_v54 = vpack.c.bf16 %v256_v46, %v255_v41  ;;  %v257_v58 = vld [vmem:[#allocation6 + $0x520] sm:$0xff]  ;;  %v259_v5 = vld [vmem:[#allocation6 + $0x530] sm:$0xff] }
  0x8f   :  { %v1591_v53 = vpack.c.bf16 %v224_v40, %v223_v39  ;;  %v1627_v1 = vpack.c.bf16 %v258_v60, %v257_v58  ;;  %v228_v4 = vld [vmem:[#allocation6 + $0x438] sm:$0xff]  ;;  %v245_v8 = vld [vmem:[#allocation6 + $0x4c0] sm:$0xff]  ;;  %v230_v17 = vld [vmem:[#allocation6 + $0x448] sm:$0xff] }
  0x90   :  { %1540 = vmatpush3.bf16.msra.mxu0 %v1539_v48  ;;  %v242_v48 = vld [vmem:[#allocation6 + $0x4a8] sm:$0xff]  ;;  %v260_v7 = vld [vmem:[#allocation6 + $0x538] sm:$0xff]  ;;  %v261_v18 = vld [vmem:[#allocation6 + $0x540] sm:$0xff] }
  0x91   :  { %1572 = vmatpush3.bf16.msra.mxu1 %v1571_v50  ;;  %1542 = vmatprep.subr.bf16.mxu0 %v1541_v51  ;;  %v274_v50 = vld [vmem:[#allocation6 + $0x5a8] sm:$0xff]  ;;  %v402_v51 = vcombine.high %v2010_v42, %v2010_v42  ;;  %v1631_v14 = vpack.c.bf16 %v260_v7, %v259_v5  ;;  %v247_v21 = vld [vmem:[#allocation6 + $0x4d0] sm:$0xff]  ;;  %v264_v32 = vld [vmem:[#allocation6 + $0x558] sm:$0xff] }
  0x92   :  { %1574 = vmatprep.subr.bf16.mxu1 %v1573_v55  ;;  %v1593_v55 = vpack.c.bf16 %v242_v48, %v241_v47  ;;  %v1625_v59 = vpack.c.bf16 %v274_v50, %v273_v49  ;;  %v262_v20 = vld [vmem:[#allocation6 + $0x548] sm:$0xff]  ;;  %v279_v23 = vld [vmem:[#allocation6 + $0x5d0] sm:$0xff]  ;;  %v249_v34 = vld [vmem:[#allocation6 + $0x4e0] sm:$0xff] }
  0x93   :  { %v1635_v26 = vpack.c.bf16 %v262_v20, %v261_v18  ;;  %v231_v28 = vld [vmem:[#allocation6 + $0x450] sm:$0xff]  ;;  %v282_v37 = vld [vmem:[#allocation6 + $0x5e8] sm:$0xff]  ;;  %v233_v41 = vld [vmem:[#allocation6 + $0x460] sm:$0xff] }
  0x94   :  { %1544 = vmatpush3.bf16.msra.mxu0 %v1543_v61  ;;  %v243_v61 = vld [vmem:[#allocation6 + $0x4b0] sm:$0xff]  ;;  %v234_v43 = vld [vmem:[#allocation6 + $0x468] sm:$0xff]  ;;  %v252_v49 = vld [vmem:[#allocation6 + $0x4f8] sm:$0xff] }
  0x95   :  { %1576 = vmatpush3.bf16.msra.mxu1 %v1575_v62  ;;  %1546 = vmatprep.subr.bf16.mxu0 %v1545_v63  ;;  %v244_v62 = vld [vmem:[#allocation6 + $0x4b8] sm:$0xff]  ;;  %v275_v63 = vld [vmem:[#allocation6 + $0x5b0] sm:$0xff]  ;;  %v266_v47 = vld [vmem:[#allocation6 + $0x568] sm:$0xff] }
  0x96   :  { %1578 = vmatprep.subr.bf16.mxu1 %v1577_v3  ;;  %v1597_v2 = vpack.c.bf16 %v244_v62, %v243_v61  ;;  %v227_v3 = vld [vmem:[#allocation6 + $0x430] sm:$0xff]  ;;  %v1629_v6 = vpack.c.bf16 %v276_v0, %v275_v63  ;;  %v236_v58 = vld [vmem:[#allocation6 + $0x478] sm:$0xff]  ;;  %v301_v61 = vld [vmem:[#allocation6 + $0x680] sm:$0xff] }
  0x97   :  { %v1599_v12 = vpack.c.bf16 %v228_v4, %v227_v3  ;;  %v263_v30 = vld [vmem:[#allocation6 + $0x550] sm:$0xff]  ;;  %v268_v60 = vld [vmem:[#allocation6 + $0x578] sm:$0xff]  ;;  %v302_v62 = vld [vmem:[#allocation6 + $0x688] sm:$0xff] }
  0x98   :  { %1548 = vmatpush3.bf16.msra.mxu0 %v1547_v9  ;;  %v246_v9 = vld [vmem:[#allocation6 + $0x4c8] sm:$0xff]  ;;  %v1639_v39 = vpack.c.bf16 %v264_v32, %v263_v30  ;;  %v251_v48 = vld [vmem:[#allocation6 + $0x4f0] sm:$0xff]  ;;  %v333_v63 = vld [vmem:[#allocation6 + $0x780] sm:$0xff]  ;;  %v1649_v3 = vpack.c.bf16 %v302_v62, %v301_v61 }
  0x99   :  { %1580 = vmatpush3.bf16.msra.mxu1 %v1579_v10  ;;  %1550 = vmatprep.subr.bf16.mxu0 %v1549_v11  ;;  %v277_v10 = vld [vmem:[#allocation6 + $0x5c0] sm:$0xff]  ;;  %v278_v11 = vld [vmem:[#allocation6 + $0x5c8] sm:$0xff]  ;;  %v1601_v15 = vpack.c.bf16 %v246_v9, %v245_v8  ;;  %v283_v50 = vld [vmem:[#allocation6 + $0x5f0] sm:$0xff] }
  0x9a   :  { %1582 = vmatprep.subr.bf16.mxu1 %v1581_v16  ;;  %v229_v16 = vld [vmem:[#allocation6 + $0x440] sm:$0xff]  ;;  %v1633_v19 = vpack.c.bf16 %v278_v11, %v277_v10  ;;  %v334_v0 = vld [vmem:[#allocation6 + $0x788] sm:$0xff]  ;;  %v303_v9 = vld [vmem:[#allocation6 + $0x690] sm:$0xff] }
  0x9b   :  { %v285_v4 = vld [vmem:[#allocation6 + $0x600] sm:$0xff]  ;;  %v286_v5 = vld [vmem:[#allocation6 + $0x608] sm:$0xff]  ;;  %v1681_v7 = vpack.c.bf16 %v334_v0, %v333_v63  ;;  %v304_v10 = vld [vmem:[#allocation6 + $0x698] sm:$0xff] }
  0x9c   :  { %1552 = vmatpush3.bf16.msra.mxu0 %v1551_v22  ;;  %v248_v22 = vld [vmem:[#allocation6 + $0x4d8] sm:$0xff]  ;;  %v318_v8 = vld [vmem:[#allocation6 + $0x708] sm:$0xff]  ;;  %v1653_v18 = vpack.c.bf16 %v304_v10, %v303_v9  ;;  %v289_v32 = vld [vmem:[#allocation6 + $0x620] sm:$0xff] }
  0x9d   :  { %1584 = vmatpush3.bf16.msra.mxu1 %v1583_v24  ;;  %1586 = vmatprep.subr.bf16.mxu0 %v1585_v25  ;;  %v280_v24 = vld [vmem:[#allocation6 + $0x5d8] sm:$0xff]  ;;  %v1603_v25 = vpack.c.bf16 %v230_v17, %v229_v16  ;;  %v1605_v27 = vpack.c.bf16 %v248_v22, %v247_v21  ;;  %v1651_v16 = vpack.c.bf16 %v286_v5, %v285_v4  ;;  %v319_v21 = vld [vmem:[#allocation6 + $0x710] sm:$0xff]  ;;  %v326_v61 = vld [vmem:[#allocation6 + $0x748] sm:$0xff] }
  0x9e   :  { %1618 = vmatprep.subr.bf16.mxu1 %v1617_v29  ;;  %v232_v29 = vld [vmem:[#allocation6 + $0x458] sm:$0xff]  ;;  %v1637_v31 = vpack.c.bf16 %v280_v24, %v279_v23  ;;  %v305_v24 = vld [vmem:[#allocation6 + $0x6a0] sm:$0xff]  ;;  %v311_v62 = vld [vmem:[#allocation6 + $0x6d0] sm:$0xff] }
  0x9f   :  { %642 = vmatmul.mubr.f32.vlgmr.msra.gmra.mrb[2].mxu0 %v2000_v33  ;;  %v403_v33 = vcombine.high %v2016_v52, %v2016_v52  ;;  %v288_v20 = vld [vmem:[#allocation6 + $0x618] sm:$0xff]  ;;  %v343_v0 = vld [vmem:[#allocation6 + $0x7d0] sm:$0xff]  ;;  %v313_v9 = vld [vmem:[#allocation6 + $0x6e0] sm:$0xff] }
  0xa0   :  { %1588 = vmatpush3.bf16.msra.mxu0 %v1587_v35  ;;  %712 = vmatmul.mubr.f32.vlgmr.msra.gmra.mrb[2].mxu1 %v2005_v45  ;;  %v1595_v45 = vpack.c.bf16 %v226_v57, %v225_v56  ;;  %v250_v35 = vld [vmem:[#allocation6 + $0x4e8] sm:$0xff]  ;;  %v1613_v56 = vpack.c.bf16 %v252_v49, %v251_v48  ;;  %v235_v57 = vld [vmem:[#allocation6 + $0x470] sm:$0xff]  ;;  %v320_v23 = vld [vmem:[#allocation6 + $0x718] sm:$0xff] }
  0xa1   :  { %1620 = vmatpush3.bf16.msra.mxu1 %v1619_v36  ;;  %1590 = vmatprep.subr.bf16.mxu0 %v1589_v38  ;;  %v281_v36 = vld [vmem:[#allocation6 + $0x5e0] sm:$0xff]  ;;  %v1607_v38 = vpack.c.bf16 %v232_v29, %v231_v28  ;;  %v1609_v40 = vpack.c.bf16 %v250_v35, %v249_v34  ;;  %v1687_v30 = vpack.c.bf16 %v320_v23, %v319_v21  ;;  %v290_v34 = vld [vmem:[#allocation6 + $0x628] sm:$0xff]  ;;  %v324_v49 = vld [vmem:[#allocation6 + $0x738] sm:$0xff] }
  0xa2   :  { %1622 = vmatprep.subr.bf16.mxu1 %v1621_v44  ;;  %781 = vmatprep.mubr.f32.mxu0 %v402_v51  ;;  %v265_v44 = vld [vmem:[#allocation6 + $0x560] sm:$0xff]  ;;  %v1641_v46 = vpack.c.bf16 %v282_v37, %v281_v36  ;;  %v284_v51 = vld [vmem:[#allocation6 + $0x5f8] sm:$0xff]  ;;  %v322_v37 = vld [vmem:[#allocation6 + $0x728] sm:$0xff] }
  0xa3   :  { %851 = vmatprep.mubr.f32.mxu1 %v403_v33  ;;  %v267_v33 = vld [vmem:[#allocation6 + $0x570] sm:$0xff]  ;;  %v321_v35 = vld [vmem:[#allocation6 + $0x720] sm:$0xff]  ;;  %v312_v63 = vld [vmem:[#allocation6 + $0x6d8] sm:$0xff] }
  0xa4   :  { %1592 = vmatpush3.bf16.msra.mxu0 %v1591_v53  ;;  %v1611_v53 = vpack.c.bf16 %v234_v43, %v233_v41  ;;  %v1659_v41 = vpack.c.bf16 %v290_v34, %v289_v32  ;;  %v295_v4 = vld [vmem:[#allocation6 + $0x650] sm:$0xff]  ;;  %v296_v5 = vld [vmem:[#allocation6 + $0x658] sm:$0xff]  ;;  %v314_v10 = vld [vmem:[#allocation6 + $0x6e8] sm:$0xff] }
  0xa5   :  { %1624 = vmatpush3.bf16.msra.mxu1 %v1623_v54  ;;  %1594 = vmatprep.subr.bf16.mxu0 %v1593_v55  ;;  %v92_v54 = vld [vmem:[#allocation3 + $0x18] sm:$0xff]  ;;  %v1643_v55 = vpack.c.bf16 %v266_v47, %v265_v44  ;;  %v291_v44 = vld [vmem:[#allocation6 + $0x630] sm:$0xff]  ;;  %v329_v21 = vld [vmem:[#allocation6 + $0x760] sm:$0xff] }
  0xa6   :  { %1626 = vmatprep.subr.bf16.mxu1 %v1625_v59  ;;  %v1645_v59 = vpack.c.bf16 %v284_v51, %v283_v50  ;;  %v2022_v11 = vrot.slane %v92_v54, %v1995_v13  ;;  %v323_v47 = vld [vmem:[#allocation6 + $0x730] sm:$0xff]  ;;  %v309_v50 = vld [vmem:[#allocation6 + $0x6c0] sm:$0xff]  ;;  %v310_v51 = vld [vmem:[#allocation6 + $0x6c8] sm:$0xff] }
  0xa7   :  { %v330_v23 = vld [vmem:[#allocation6 + $0x768] sm:$0xff]  ;;  %v331_v34 = vld [vmem:[#allocation6 + $0x770] sm:$0xff] }
  0xa8   :  { %1596 = vmatpush3.bf16.msra.mxu0 %v1595_v45  ;;  %v404_v45 = vcombine.high %v92_v54, %v92_v54  ;;  %v342_v54 = vld [vmem:[#allocation6 + $0x7c8] sm:$0xff] }
  0xa9   :  { %1628 = vmatpush3.bf16.msra.mxu1 %v1627_v1  ;;  %1598 = vmatprep.subr.bf16.mxu0 %v1597_v2  ;;  %v1615_v1 = vpack.c.bf16 %v236_v58, %v235_v57  ;;  %v1647_v2 = vpack.c.bf16 %v268_v60, %v267_v33  ;;  %v1665_v57 = vpack.c.bf16 %v310_v51, %v309_v50  ;;  %v293_v58 = vld [vmem:[#allocation6 + $0x640] sm:$0xff]  ;;  %v294_v33 = vld [vmem:[#allocation6 + $0x648] sm:$0xff] }
  0xaa   :  { %1630 = vmatprep.subr.bf16.mxu1 %v1629_v6  ;;  %v317_v6 = vld [vmem:[#allocation6 + $0x700] sm:$0xff]  ;;  %v1021_v51 = vld [vmem:[#allocation9 + $0x48] sm:$0xff] }
  0xab   :  { %v1683_v17 = vpack.c.bf16 %v318_v8, %v317_v6  ;;  %v327_v6 = vld [vmem:[#allocation6 + $0x750] sm:$0xff]  ;;  %v328_v8 = vld [vmem:[#allocation6 + $0x758] sm:$0xff]  ;;  %v1020_v50 = vld [vmem:[#allocation9 + $0x40] sm:$0xff] }
  0xac   :  { %1600 = vmatpush3.bf16.msra.mxu0 %v1599_v12  ;;  %v335_v12 = vld [vmem:[#allocation6 + $0x790] sm:$0xff] }
  0xad   :  { %1632 = vmatpush3.bf16.msra.mxu1 %v1631_v14  ;;  %1602 = vmatprep.subr.bf16.mxu0 %v1601_v15  ;;  %v336_v14 = vld [vmem:[#allocation6 + $0x798] sm:$0xff]  ;;  %v2025_v15 = vrot.slane %v404_v45, %v1995_v13  ;;  %v337_v13 = vld [vmem:[#allocation6 + $0x7a0] sm:$0xff] }
  0xae   :  { %1634 = vmatprep.subr.bf16.mxu1 %v1633_v19  ;;  %v287_v19 = vld [vmem:[#allocation6 + $0x610] sm:$0xff]  ;;  %v1685_v22 = vpack.c.bf16 %v336_v14, %v335_v12  ;;  %v344_v45 = vld [vmem:[#allocation6 + $0x7d8] sm:$0xff]  ;;  %v345_v12 = vld [vmem:[#allocation6 + $0x7e0] sm:$0xff] }
  0xaf   :  { %v420_v28 = vcombine.high %v2025_v15, %v2025_v15  ;;  %v1655_v29 = vpack.c.bf16 %v288_v20, %v287_v19  ;;  %v346_v14 = vld [vmem:[#allocation6 + $0x7e8] sm:$0xff]  ;;  %v297_v19 = vld [vmem:[#allocation6 + $0x660] sm:$0xff] }
  0xb0   :  { %1604 = vmatpush3.bf16.msra.mxu0 %v1603_v25  ;;  %v306_v25 = vld [vmem:[#allocation6 + $0x6a8] sm:$0xff] }
  0xb1   :  { %1636 = vmatpush3.bf16.msra.mxu1 %v1635_v26  ;;  %1606 = vmatprep.subr.bf16.mxu0 %v1605_v27  ;;  %v419_v26 = vcombine.high %v2022_v11, %v2022_v11  ;;  %v338_v27 = vld [vmem:[#allocation6 + $0x7a8] sm:$0xff] }
  0xb2   :  { %1638 = vmatprep.subr.bf16.mxu1 %v1637_v31  ;;  %v1657_v31 = vpack.c.bf16 %v306_v25, %v305_v24  ;;  %v1689_v36 = vpack.c.bf16 %v338_v27, %v337_v13  ;;  %v298_v20 = vld [vmem:[#allocation6 + $0x668] sm:$0xff]  ;;  %v315_v24 = vld [vmem:[#allocation6 + $0x6f0] sm:$0xff]  ;;  %v316_v25 = vld [vmem:[#allocation6 + $0x6f8] sm:$0xff] }
  0xb3   :  { %v348_v13 = vld [vmem:[#allocation6 + $0x7f8] sm:$0xff]  ;;  %v1675_v27 = vpack.c.bf16 %v298_v20, %v297_v19 }
  0xb4   :  { %1608 = vmatpush3.bf16.msra.mxu0 %v1607_v38  ;;  %v308_v38 = vld [vmem:[#allocation6 + $0x6b8] sm:$0xff] }
  0xb5   :  { %1640 = vmatpush3.bf16.msra.mxu1 %v1639_v39  ;;  %1610 = vmatprep.subr.bf16.mxu0 %v1609_v40  ;;  %v339_v39 = vld [vmem:[#allocation6 + $0x7b0] sm:$0xff]  ;;  %v340_v40 = vld [vmem:[#allocation6 + $0x7b8] sm:$0xff] }
  0xb6   :  { %1642 = vmatprep.subr.bf16.mxu1 %v1641_v46  ;;  %v292_v46 = vld [vmem:[#allocation6 + $0x638] sm:$0xff]  ;;  %v1693_v48 = vpack.c.bf16 %v340_v40, %v339_v39  ;;  %v1901_v40 = vmov 0.0|0.0  }
  0xb7   :  { %v1014_v39 = vld [vmem:[#allocation9 + $0x10] sm:$0xff] }
  0xb8   :  { %1612 = vmatpush3.bf16.msra.mxu0 %v1611_v53  ;;  %v341_v53 = vld [vmem:[#allocation6 + $0x7c0] sm:$0xff] }
  0xb9   :  { %1644 = vmatpush3.bf16.msra.mxu1 %v1643_v55  ;;  %1614 = vmatprep.subr.bf16.mxu0 %v1613_v56  ;;  %v1663_v55 = vpack.c.bf16 %v292_v46, %v291_v44  ;;  %v1695_v56 = vpack.c.bf16 %v324_v49, %v323_v47  ;;  %v1697_v60 = vpack.c.bf16 %v342_v54, %v341_v53  ;;  %v1016_v44 = vld [vmem:[#allocation9 + $0x20] sm:$0xff]  ;;  %v1017_v46 = vld [vmem:[#allocation9 + $0x28] sm:$0xff]  ;;  %v1022_v54 = vld [vmem:[#allocation9 + $0x50] sm:$0xff] }
  0xba   :  { %1646 = vmatprep.subr.bf16.mxu1 %v1645_v59  ;;  %v325_v59 = vld [vmem:[#allocation6 + $0x740] sm:$0xff]  ;;  %v1720_v47 = vpack.c.bf16 %v1017_v46, %v1016_v44  ;;  %v1726_v53 = vpack.c.bf16 %v1021_v51, %v1020_v50 }
  0xbc   :  { %1616 = vmatpush3.bf16.msra.mxu0 %v1615_v1  ;;  %v1667_v1 = vpack.c.bf16 %v294_v33, %v293_v58  ;;  %v1025_v58 = vld [vmem:[#allocation9 + $0x68] sm:$0xff] }
  0xbd   :  { %1648 = vmatpush3.bf16.msra.mxu1 %v1647_v2  ;;  %1650 = vmatprep.subr.bf16.mxu0 %v1649_v3  ;;  %v1699_v2 = vpack.c.bf16 %v326_v61, %v325_v59  ;;  %v1669_v3 = vpack.c.bf16 %v312_v63, %v311_v62  ;;  %v1026_v59 = vld [vmem:[#allocation9 + $0x70] sm:$0xff] }
  0xbe   :  { %1682 = vmatprep.subr.bf16.mxu1 %v1681_v7  ;;  %v1701_v7 = vpack.c.bf16 %v344_v45, %v343_v0 }
  0xbf   :  { %782 = vmatmul.mubr.f32.vlgmr.msra.gmra.mrb[4].mxu0 %v2010_v42  ;;  %v307_v42 = vld [vmem:[#allocation6 + $0x6b0] sm:$0xff] }
  0xc0   :  { %1652 = vmatpush3.bf16.msra.mxu0 %v1651_v16  ;;  %852 = vmatmul.mubr.f32.vlgmr.msra.gmra.mrb[4].mxu1 %v2016_v52  ;;  %v1691_v52 = vpack.c.bf16 %v322_v37, %v321_v35  ;;  %v1661_v43 = vpack.c.bf16 %v308_v38, %v307_v42  ;;  %v1671_v16 = vpack.c.bf16 %v296_v5, %v295_v4  ;;  %v332_v35 = vld [vmem:[#allocation6 + $0x778] sm:$0xff]  ;;  %v1012_v42 = vld [vmem:[#allocation9] sm:$0xff]  ;;  %v1013_v38 = vld [vmem:[#allocation9 + $0x8] sm:$0xff] }
  0xc1   :  { %1684 = vmatpush3.bf16.msra.mxu1 %v1683_v17  ;;  %1654 = vmatprep.subr.bf16.mxu0 %v1653_v18  ;;  %v1703_v17 = vpack.c.bf16 %v328_v8, %v327_v6  ;;  %v1673_v18 = vpack.c.bf16 %v314_v10, %v313_v9  ;;  %v1711_v37 = vpack.c.bf16 %v332_v35, %v331_v34 }
  0xc2   :  { %1686 = vmatprep.subr.bf16.mxu1 %v1685_v22  ;;  %921 = vmatprep.mubr.f32.mxu0 %v419_v26  ;;  %v1705_v22 = vpack.c.bf16 %v346_v14, %v345_v12  ;;  %v347_v26 = vld [vmem:[#allocation6 + $0x7f0] sm:$0xff] }
  0xc3   :  { %991 = vmatprep.mubr.f32.mxu1 %v420_v28  ;;  %v1707_v28 = vpack.c.bf16 %v330_v23, %v329_v21  ;;  %v1709_v32 = vpack.c.bf16 %v348_v13, %v347_v26 }
  0xc4   :  { %1656 = vmatpush3.bf16.msra.mxu0 %v1655_v29  ;;  %v1677_v29 = vpack.c.bf16 %v316_v25, %v315_v24 }
  0xc5   :  { %1688 = vmatpush3.bf16.msra.mxu1 %v1687_v30  ;;  %1658 = vmatprep.subr.bf16.mxu0 %v1657_v31  ;;  %v299_v30 = vld [vmem:[#allocation6 + $0x670] sm:$0xff]  ;;  %v300_v31 = vld [vmem:[#allocation6 + $0x678] sm:$0xff] }
  0xc6   :  { %1690 = vmatprep.subr.bf16.mxu1 %v1689_v36  ;;  %v1679_v36 = vpack.c.bf16 %v300_v31, %v299_v30 }
  0xc8   :  { %1660 = vmatpush3.bf16.msra.mxu0 %v1659_v41  ;;  %v1714_v41 = vpack.c.bf16 %v1013_v38, %v1012_v42 }
  0xc9   :  { %1692 = vmatpush3.bf16.msra.mxu1 %v1691_v52  ;;  %1662 = vmatprep.subr.bf16.mxu0 %v1661_v43  ;;  %v1015_v52 = vld [vmem:[#allocation9 + $0x18] sm:$0xff] }
  0xca   :  { %1694 = vmatprep.subr.bf16.mxu1 %v1693_v48  ;;  %v1717_v43 = vpack.c.bf16 %v1015_v52, %v1014_v39  ;;  %v1019_v48 = vld [vmem:[#allocation9 + $0x38] sm:$0xff] }
  0xcc   :  { %1664 = vmatpush3.bf16.msra.mxu0 %v1663_v55  ;;  %v1023_v55 = vld [vmem:[#allocation9 + $0x58] sm:$0xff] }
  0xcd   :  { %1696 = vmatpush3.bf16.msra.mxu1 %v1695_v56  ;;  %1666 = vmatprep.subr.bf16.mxu0 %v1665_v57  ;;  %v1729_v56 = vpack.c.bf16 %v1023_v55, %v1022_v54  ;;  %v1024_v57 = vld [vmem:[#allocation9 + $0x60] sm:$0xff] }
  0xce   :  { %1698 = vmatprep.subr.bf16.mxu1 %v1697_v60  ;;  %v1732_v33 = vpack.c.bf16 %v1025_v58, %v1024_v57  ;;  %v1027_v60 = vld [vmem:[#allocation9 + $0x78] sm:$0xff] }
  0xcf   :  { %v1735_v61 = vpack.c.bf16 %v1027_v60, %v1026_v59 }
  0xd0   :  { %1668 = vmatpush3.bf16.msra.mxu0 %v1667_v1 }
  0xd1   :  { %1700 = vmatpush3.bf16.msra.mxu1 %v1699_v2  ;;  %1670 = vmatprep.subr.bf16.mxu0 %v1669_v3 }
  0xd2   :  { %1702 = vmatprep.subr.bf16.mxu1 %v1701_v7 }
  0xd4   :  { %1672 = vmatpush3.bf16.msra.mxu0 %v1671_v16 }
  0xd5   :  { %1704 = vmatpush3.bf16.msra.mxu1 %v1703_v17  ;;  %1674 = vmatprep.subr.bf16.mxu0 %v1673_v18 }
  0xd6   :  { %1706 = vmatprep.subr.bf16.mxu1 %v1705_v22 }
  0xd8   :  { %1676 = vmatpush3.bf16.msra.mxu0 %v1675_v27 }
  0xd9   :  { %1708 = vmatpush3.bf16.msra.mxu1 %v1707_v28  ;;  %1678 = vmatprep.subr.bf16.mxu0 %v1677_v29 }
  0xda   :  { %1710 = vmatprep.subr.bf16.mxu1 %v1709_v32  ;;  %v1123_v32 = vld [vmem:[#allocation8] ss:$0 sm:$0xff] }
  0xdc   :  { %1680 = vmatpush3.bf16.msra.mxu0 %v1679_v36 }
  0xdd   :  { %1712 = vmatpush3.bf16.msra.mxu1 %v1711_v37  ;;  %1713 = vmatprep.subr.bf16.mxu0 %v1901_v40  ;;  %v1124_v37 = vld [vmem:[#allocation11] ss:$0 sm:$0xff] }
  0xdf   :  { %922 = vmatmul.mubr.f32.vlgmr.msra.gmra.mrb[6].mxu0 %v2022_v11  ;;  %v1018_v11 = vld [vmem:[#allocation9 + $0x30] sm:$0xff] }
  0xe0   :  { %992 = vmatmul.mubr.f32.vlgmr.msra.gmra.mrb[6].mxu1 %v2025_v15  ;;  %1715 = vmatpush3.bf16.msra.mxu0 %v1714_v41  ;;  %v1902_v15 = vmov 0.0   ;;  %v1723_v49 = vpack.c.bf16 %v1019_v48, %v1018_v11 }
  0xe1   :  { %1716 = vmatprep.subr.bf16.mxu0 %v1901_v40  ;;  %87 = vst [vmem:[#allocation2] sm:$0x3] %v1902_v15  ;;  %1454 = vmatprep.mubr.msk.f32.mxu0 %vm1903_vm0, %v1902_v15 }
  0xe4   :  { %1718 = vmatpush3.bf16.msra.mxu0 %v1717_v43 }
  0xe5   :  { %1719 = vmatprep.subr.bf16.mxu0 %v1901_v40 }
  0xe8   :  { %1721 = vmatpush3.bf16.msra.mxu0 %v1720_v47  ;;  %v88_v29 = vld [vmem:[#allocation2] sm:$0x3] }
  0xe9   :  { %1722 = vmatprep.subr.bf16.mxu0 %v1901_v40 }
  0xec   :  { %1724 = vmatpush3.bf16.msra.mxu0 %v1723_v49 }
  0xed   :  { %1725 = vmatprep.subr.bf16.mxu0 %v1901_v40 }
  0xf0   :  { %1727 = vmatpush3.bf16.msra.mxu0 %v1726_v53 }
  0xf1   :  { %1728 = vmatprep.subr.bf16.mxu0 %v1901_v40 }
  0xf4   :  { %1730 = vmatpush3.bf16.msra.mxu0 %v1729_v56 }
  0xf5   :  { %1731 = vmatprep.subr.bf16.mxu0 %v1901_v40 }
  0xf8   :  { %1733 = vmatpush3.bf16.msra.mxu0 %v1732_v33 }
  0xf9   :  { %1734 = vmatprep.subr.bf16.mxu0 %v1901_v40 }
  0xfc   :  { %1736 = vmatpush3.bf16.msra.mxu0 %v1735_v61 }
 0x152   :  { %v1157_v62 = vpop.f32.mrb[0].mxu0 }
 0x153   :  { %v1192_v63 = vpop.f32.mrb[0].mxu1  ;;  %v1158_v0 = vpop.f32.mrb[1].mxu0 }
 0x154   :  { %v1159_v45 = vadd.f32 %v1158_v0, %v1157_v62  ;;  %v1193_v1 = vpop.f32.mrb[1].mxu1 }
 0x155   :  { %v1194_v2 = vadd.f32 %v1193_v1, %v1192_v63 }
 0x157   :  { %v574_v3 = vadd.f32 %v1194_v2, %v1159_v45 }
 0x172   :  { %v1227_v4 = vpop.f32.mrb[2].mxu0 }
 0x173   :  { %v1228_v5 = vpop.f32.mrb[3].mxu0  ;;  %v1262_v6 = vpop.f32.mrb[2].mxu1 }
 0x174   :  { %v1229_v7 = vadd.f32 %v1228_v5, %v1227_v4  ;;  %v1263_v8 = vpop.f32.mrb[3].mxu1 }
 0x175   :  { %v1264_v9 = vadd.f32 %v1263_v8, %v1262_v6 }
 0x176   :  { %v644_v10 = vadd.f32 %v1229_v7, %v574_v3 }
 0x178   :  { %v714_v12 = vadd.f32 %v1264_v9, %v644_v10 }
 0x192   :  { %v1297_v14 = vpop.f32.mrb[4].mxu0 }
 0x193   :  { %v1298_v16 = vpop.f32.mrb[5].mxu0  ;;  %v1332_v17 = vpop.f32.mrb[4].mxu1 }
 0x194   :  { %v1299_v18 = vadd.f32 %v1298_v16, %v1297_v14  ;;  %v1333_v19 = vpop.f32.mrb[5].mxu1 }
 0x195   :  { %v1334_v20 = vadd.f32 %v1333_v19, %v1332_v17 }
 0x196   :  { %v784_v21 = vadd.f32 %v1299_v18, %v714_v12 }
 0x198   :  { %v854_v22 = vadd.f32 %v1334_v20, %v784_v21 }
 0x1b2   :  { %v1367_v23 = vpop.f32.mrb[6].mxu0 }
 0x1b3   :  { %v1368_v24 = vpop.f32.mrb[7].mxu0  ;;  %v1402_v25 = vpop.f32.mrb[6].mxu1 }
 0x1b4   :  { %v1369_v26 = vadd.f32 %v1368_v24, %v1367_v23  ;;  %v1403_v13 = vpop.f32.mrb[7].mxu1 }
 0x1b5   :  { %v1404_v27 = vadd.f32 %v1403_v13, %v1402_v25 }
 0x1b6   :  { %v924_v28 = vadd.f32 %v1369_v26, %v854_v22 }
 0x1b8   :  { %v994_v30 = vadd.f32 %v1404_v27, %v924_v28 }
 0x1ba   :  { %v997_v31 = vadd.f32 %v994_v30, %v88_v29 }
 0x1bc   :  { %998 = vst [vmem:[#allocation2] sm:$0x3] %v997_v31 }
 0x1c3   :  { %v1002_v34 = vld [vmem:[#allocation2] sm:$0x3] }
 0x1c4   :  { %v1010_v35 = vadd.f32 %v1123_v32, %v1002_v34 }
 0x1c6   :  { %v1011_v36 = vmax.f32 %v1010_v35, 0.0 }
 0x1c8   :  { %1455 = vmatmul.mubr.f32.vlgmr.msra.gmra.mrb[8].mxu0 %v1011_v36 }
 0x29b   :  { %v1101_v42 = vpop.f32.mrb[8].mxu0 }
 0x29c   :  { %v1102_v38 = vadd.f32 %v1124_v37, %v1101_v42  ;;  %v1456_v39 = vpop.f32.mrb[9].mxu0 }
 0x29e   :  { %1105 = vst [vmem:[#allocation12] sm:$0x3] %v1102_v38 }
 0x29f   :  { %1874 = shalt.err (!%p1871_p2)
}
 0x2a0   :  { %s1875_s30 = scalar_lea.hbm %s2052_s5, 32 }
 0x2a1   :  { %p1876_p3 = scmp.ne.s32.totalorder %s2052_s5, %s1875_s30  ;;  %p1879_p4 = scmp.lt.u32.totalorder %s1875_s30, %s2052_s5 }
 0x2a3   :  { %p1881_p5 = pnand %p1879_p4, %p1876_p3 }
 0x2a5   :  { %1884 = shalt.err (!%p1881_p5)
}
 0x2a6   :  { %1115 = dma.vmem_to_hbm [thread:$0]  %s1113_s27, 32, %s2052_s5, [#allocation5]  }
 0x2a7   :  { %1891 = dma.done.wait [#allocation5], 32  }
 0x2a8   :  { %1892 = vsyncadd [#allocation5], 4294967264 }
 0x2a9   :  { %1119 = vsyncpa [#allocation4], 1 }
 0x2aa   :  { %1120 = vsyncpa [#allocation7], 1 }
 0x2ab   :  { %1121 = vsyncpa [#allocation10], 1 }
 0x2ac   :  { %1122 = vsyncpa [#allocation5], 1 }

</bundles_post_ra>
